<compile_context>
chip_gen: v6e
topology: v6e:2x2x1
jax: 0.10.0
libtpu: 0.0.40
codegen_flags: <defaults>
</compile_context>

<pallas_src>
import functools

import jax
import jax.numpy as jnp
from jax import lax
from jax.experimental import pallas as pl
from jax.experimental.pallas import tpu as pltpu


def _round_up(x: int, m: int) -> int:
    return ((x + m - 1) // m) * m


def _select_tiles(batch: int, n_hidden: int, n_visible: int, use_bf16: bool):
    """Static tile / padded-shape selection (pure Python on ints)."""
    sub = 16 if use_bf16 else 8          # bf16 min sublane tile is 16
    cap_m = 1024 if use_bf16 else 512
    cap_n = 1024
    cap_k = 2048 if use_bf16 else 1024

    nh128 = _round_up(n_hidden, 128)
    nv128 = _round_up(n_visible, 128)

    tm = min(cap_m, _round_up(batch, sub))
    Bp = _round_up(batch, tm)
    tn = min(cap_n, nh128)
    tk = min(cap_k, nv128)

    # v7x: if the whole batch is a single M block, make sure there are >= 2
    # N blocks so dimension_semantics=("parallel","parallel",...) can shard
    # the output tiles across both TensorCores.
    if Bp // tm == 1 and _round_up(n_hidden, tn) // tn < 2 and nh128 >= 256:
        tn = max(128, ((nh128 // 2) // 128) * 128)

    Np = _round_up(n_hidden, tn)
    Kp = _round_up(n_visible, tk)
    return tm, tn, tk, Bp, Np, Kp


def _rbm_kernel(v_ref, w_ref, b_ref, o_ref, acc_ref, *, approx_recip):
    # v_ref:   (tm, tk)  visible-units tile (f32 or bf16, as stored in HBM)
    # w_ref:   (tn, tk)  weight tile in PyTorch (n_hidden, n_visible) layout
    # b_ref:   (1,  tn)  f32 bias tile
    # o_ref:   (tm, tn)  output tile, written once at the last K step
    # acc_ref: (tm, tn)  f32 accumulator, resident across the K grid axis
    k = pl.program_id(2)

    @pl.when(k == 0)
    def _init():
        acc_ref[...] = jnp.zeros_like(acc_ref)

    # (tm, tk) . (tn, tk) contracted on axis 1 of both -> (tm, tn) on the MXU.
    # This is v @ W^T without any transpose of W (NT matmul; K sits on the lane
    # dim of both operands, so no per-tile vxpose/relayout is expected).
    acc_ref[...] += lax.dot_general(
        v_ref[...],
        w_ref[...],
        dimension_numbers=(((1,), (1,)), ((), ())),
        preferred_element_type=jnp.float32,
    )

    @pl.when(k == pl.num_programs(2) - 1)
    def _finalize():
        h = acc_ref[...] + b_ref[...]                 # f32 bias add (VPU)
        if approx_recip:
            # EUP exp + EUP approx reciprocal (separate VLIW slots).
            e = jnp.exp(-h)
            o_ref[...] = pl.reciprocal(1.0 + e, approx=True).astype(o_ref.dtype)
        else:
            o_ref[...] = jax.nn.sigmoid(h).astype(o_ref.dtype)   # exact f32 path


def prepare_rbm_params(weight, bias, *, batch_hint, use_bf16_mxu=False):
    """Pad (and optionally bf16-cast) the parameters ONCE at setup time.

    Doing this per forward call costs an extra full HBM read+write of W; hoist
    it here and pass the prepared arrays to rbm_layer_forward together with the
    true n_hidden / n_visible.  `batch_hint` must match the batch used at call
    time (tile selection depends on it).
    """
    n_hidden, n_visible = weight.shape
    _, _, _, _, Np, Kp = _select_tiles(batch_hint, n_hidden, n_visible, use_bf16_mxu)

    w_p = weight
    if weight.shape != (Np, Kp):
        w_p = jnp.pad(weight, ((0, Np - n_hidden), (0, Kp - n_visible)))
    op_dtype = jnp.bfloat16 if use_bf16_mxu else weight.dtype
    if w_p.dtype != op_dtype:
        w_p = w_p.astype(op_dtype)

    b_p = bias.astype(jnp.float32)
    if b_p.shape[0] != Np:
        b_p = jnp.pad(b_p, ((0, Np - n_hidden),))
    b_p = b_p.reshape(1, Np)
    return w_p, b_p


@functools.partial(jax.jit, static_argnames=("n_hidden", "n_visible", "use_bf16_mxu"))
def rbm_layer_forward(v, weight, bias, *, n_hidden=None, n_visible=None,
                      use_bf16_mxu=False):
    """RBMLayer forward: sigmoid(v @ weight.T + bias).

    v:      (B, n_visible) float32
    weight: (n_hidden, n_visible) raw PyTorch layout, OR pre-padded/cast output
            of prepare_rbm_params (then pass n_hidden / n_visible explicitly).
    bias:   (n_hidden,) or pre-padded (1, Np) float32.
    use_bf16_mxu: stream bf16 operands from HBM (f32 accumulate + f32 epilogue).
    """
    B = v.shape[0]
    n_visible = v.shape[1] if n_visible is None else n_visible
    n_hidden = weight.shape[0] if n_hidden is None else n_hidden
    out_dtype = v.dtype
    op_dtype = jnp.bfloat16 if use_bf16_mxu else v.dtype

    tm, tn, tk, Bp, Np, Kp = _select_tiles(B, n_hidden, n_visible, use_bf16_mxu)

    # ---- activations: pad per call only if needed, cast at HBM level ----
    v_p = v
    if v_p.shape != (Bp, Kp):
        v_p = jnp.pad(v_p, ((0, Bp - v_p.shape[0]), (0, Kp - v_p.shape[1])))
    if v_p.dtype != op_dtype:
        v_p = v_p.astype(op_dtype)

    # ---- weights / bias: skipped entirely when pre-prepared & aligned ----
    w_p = weight
    if w_p.shape != (Np, Kp):
        w_p = jnp.pad(w_p, ((0, Np - w_p.shape[0]), (0, Kp - w_p.shape[1])))
    if w_p.dtype != op_dtype:
        w_p = w_p.astype(op_dtype)

    b_p = bias.astype(jnp.float32)
    if b_p.ndim == 1:
        if b_p.shape[0] != Np:
            b_p = jnp.pad(b_p, ((0, Np - b_p.shape[0]),))
        b_p = b_p.reshape(1, Np)
    elif b_p.shape[1] != Np:
        b_p = jnp.pad(b_p, ((0, 0), (0, Np - b_p.shape[1])))

    grid = (Bp // tm, Np // tn, Kp // tk)   # K (reduction) innermost
    grid_m, grid_n, _ = grid

    # ---- explicit VMEM budget: double-buffered inputs/outputs + accumulator ----
    op_bytes = jnp.dtype(op_dtype).itemsize
    vmem_bytes = (2 * tm * tk * op_bytes          # v blocks
                  + 2 * tn * tk * op_bytes        # W blocks
                  + 2 * tn * 4                    # bias blocks
                  + 2 * tm * tn * 4               # output blocks (f32)
                  + tm * tn * 4)                  # f32 accumulator scratch
    vmem_limit = int(min(48 << 20, max(16 << 20, vmem_bytes * 5 // 4 + (1 << 20))))

    # Real traffic model: W is re-streamed once per M block, v once per N block.
    cost = pl.CostEstimate(
        flops=2 * Bp * Kp * Np,
        transcendentals=Bp * Np,
        bytes_accessed=(Np * Kp * op_bytes * grid_m
                        + Bp * Kp * op_bytes * grid_n
                        + Np * 4 * grid_m
                        + Bp * Np * 4),
    )

    kernel = functools.partial(_rbm_kernel, approx_recip=use_bf16_mxu)

    out = pl.pallas_call(
        kernel,
        out_shape=jax.ShapeDtypeStruct((Bp, Np), out_dtype),
        grid_spec=pltpu.PrefetchScalarGridSpec(
            num_scalar_prefetch=0,
            grid=grid,
            in_specs=[
                pl.BlockSpec((tm, tk), lambda i, j, k: (i, k)),   # v tile
                # NOTE: if a profile shows exposed W DMA, add
                # pipeline_mode=pl.Buffered(3) on this spec (VMEM budget allows).
                pl.BlockSpec((tn, tk), lambda i, j, k: (j, k)),   # W tile (H,V layout)
                pl.BlockSpec((1, tn), lambda i, j, k: (0, j)),    # bias tile
            ],
            out_specs=pl.BlockSpec((tm, tn), lambda i, j, k: (i, j)),
            scratch_shapes=[pltpu.VMEM((tm, tn), jnp.float32)],
        ),
        compiler_params=pltpu.CompilerParams(
            dimension_semantics=("parallel", "parallel", "arbitrary"),
            vmem_limit_bytes=vmem_limit,
        ),
        cost_estimate=cost,
    )(v_p, w_p, b_p)

    return out[:B, :n_hidden]


def init_rbm_params(key, n_visible, n_hidden):
    """Matches RBMLayer.__init__ with nn.Sigmoid activation:
    xavier_normal_(weight, gain=1.0), zeros_(bias).
    v_bias / h_bias buffers are registered in __init__ but unused in forward()."""
    std = (2.0 / (n_visible + n_hidden)) ** 0.5
    weight = std * jax.random.normal(key, (n_hidden, n_visible), dtype=jnp.float32)
    bias = jnp.zeros((n_hidden,), dtype=jnp.float32)
    return weight, bias


# TODO(synk): dropout (dropout_rate > 0) not implemented — the default rate is 0.0,
# so the reference forward applies no dropout; a pltpu.prng_seed/prng_random_bits
# mask could be added if a nonzero rate were ever required.


if __name__ == "__main__":
    key = jax.random.PRNGKey(0)
    k_w, k_v = jax.random.split(key)

    # --- small single-tile case, consistent with the module's scale ---
    B, n_visible, n_hidden = 8, 64, 32
    weight, bias = init_rbm_params(k_w, n_visible, n_hidden)
    v = jax.random.normal(k_v, (B, n_visible), dtype=jnp.float32)
    ref = jax.nn.sigmoid(v @ weight.T + bias)

    h_prob = rbm_layer_forward(v, weight, bias)
    jax.block_until_ready(h_prob)
    assert h_prob.shape == (B, n_hidden)
    assert jnp.max(jnp.abs(h_prob - ref)) < 1e-5

    # bf16 MXU fast path: bf16 operands in HBM, f32 accumulate + f32 epilogue.
    h_bf16 = rbm_layer_forward(v, weight, bias, use_bf16_mxu=True)
    jax.block_until_ready(h_bf16)
    assert jnp.max(jnp.abs(h_bf16 - ref)) < 5e-2

    # --- multi-tile case: K split over 2 grid steps (resident accumulator),
    #     2 parallel N tiles, zero-padded K tail ---
    B2, nv2, nh2 = 64, 1536, 256
    w2, b2 = init_rbm_params(k_w, nv2, nh2)
    v2 = jax.random.normal(k_v, (B2, nv2), dtype=jnp.float32)
    ref2 = jax.nn.sigmoid(v2 @ w2.T + b2)

    h2 = rbm_layer_forward(v2, w2, b2)
    jax.block_until_ready(h2)
    assert h2.shape == (B2, nh2)
    assert jnp.max(jnp.abs(h2 - ref2)) < 1e-4

    # --- hoisted-padding path: W/bias padded once at setup, no per-call W pad ---
    w2_prep, b2_prep = prepare_rbm_params(w2, b2, batch_hint=B2)
    h2p = rbm_layer_forward(v2, w2_prep, b2_prep, n_hidden=nh2, n_visible=nv2)
    jax.block_until_ready(h2p)
    assert jnp.max(jnp.abs(h2p - ref2)) < 1e-4
    assert jnp.max(jnp.abs(h2p - h2)) < 1e-6

    print("KERNEL_OK")
</pallas_src>

<mosaic_0001>
module attributes {stable_mosaic.version = 11 : i64} {
  func.func @_rbm_kernel(%arg0: i32, %arg1: i32, %arg2: i32, %arg3: memref<8x128xf32, #tpu.memory_space<vmem>>, %arg4: memref<128x128xf32, #tpu.memory_space<vmem>>, %arg5: memref<1x128xf32, #tpu.memory_space<vmem>>, %arg6: memref<8x128xf32, #tpu.memory_space<vmem>>, %arg7: memref<8x128xf32, #tpu.memory_space<vmem>>) attributes {dimension_semantics = [#tpu.dimension_semantics<parallel>, #tpu.dimension_semantics<parallel>, #tpu.dimension_semantics<arbitrary>], iteration_bounds = array<i64: 1, 1, 1>, scalar_prefetch = 0 : i64, scratch_operands = 1 : i64, tpu.core_type = #tpu.core_type<tc>, window_params = [{transform_indices = @transform_0, window_bounds = array<i64: 8, 128>}, {transform_indices = @transform_1, window_bounds = array<i64: 128, 128>}, {transform_indices = @transform_2, window_bounds = array<i64: 1, 128>}, {transform_indices = @transform_3, window_bounds = array<i64: 8, 128>}]} {
    %c0_i32 = arith.constant 0 : i32
    %0 = arith.cmpi eq, %arg2, %c0_i32 : i32
    %1 = arith.extui %0 : i1 to i32
    %c0_i32_0 = arith.constant 0 : i32
    %2 = arith.cmpi ne, %1, %c0_i32_0 : i32
    scf.if %2 {
      %cst_10 = arith.constant 0.000000e+00 : f32
      %12 = vector.broadcast %cst_10 : f32 to vector<8x128xf32>
      %c0_11 = arith.constant 0 : index
      %c0_12 = arith.constant 0 : index
      %13 = vector.load %arg7[%c0_11, %c0_12] : memref<8x128xf32, #tpu.memory_space<vmem>>, vector<8x128xf32>
      tpu.vector_store %arg7[%c0_11, %c0_12], %12 {strides = array<i32>} : memref<8x128xf32, #tpu.memory_space<vmem>>, vector<8x128xf32>,
    } else {
    }
    %c0 = arith.constant 0 : index
    %c0_1 = arith.constant 0 : index
    %3 = vector.load %arg7[%c0, %c0_1] : memref<8x128xf32, #tpu.memory_space<vmem>>, vector<8x128xf32>
    %c0_2 = arith.constant 0 : index
    %c0_3 = arith.constant 0 : index
    %4 = vector.load %arg3[%c0_2, %c0_3] : memref<8x128xf32, #tpu.memory_space<vmem>>, vector<8x128xf32>
    %c0_4 = arith.constant 0 : index
    %c0_5 = arith.constant 0 : index
    %5 = vector.load %arg4[%c0_4, %c0_5] : memref<128x128xf32, #tpu.memory_space<vmem>>, vector<128x128xf32>
    %cst = arith.constant dense<0.000000e+00> : vector<8x128xf32>
    %6 = tpu.matmul %4, %5, %cst {dimension_numbers = #tpu.dot_dimension_numbers<[1], [1], [0], [0], [0, 0, 1, 0], [], []>} : vector<8x128xf32>, vector<128x128xf32>, vector<8x128xf32> -> vector<8x128xf32>
    %7 = arith.addf %3, %6 : vector<8x128xf32>
    %c0_6 = arith.constant 0 : index
    %c0_7 = arith.constant 0 : index
    %8 = vector.load %arg7[%c0_6, %c0_7] : memref<8x128xf32, #tpu.memory_space<vmem>>, vector<8x128xf32>
    tpu.vector_store %arg7[%c0_6, %c0_7], %7 {strides = array<i32>} : memref<8x128xf32, #tpu.memory_space<vmem>>, vector<8x128xf32>,
    %c0_i32_8 = arith.constant 0 : i32
    %9 = arith.cmpi eq, %arg2, %c0_i32_8 : i32
    %10 = arith.extui %9 : i1 to i32
    %c0_i32_9 = arith.constant 0 : i32
    %11 = arith.cmpi ne, %10, %c0_i32_9 : i32
    scf.if %11 {
      %c0_10 = arith.constant 0 : index
      %c0_11 = arith.constant 0 : index
      %12 = vector.load %arg7[%c0_10, %c0_11] : memref<8x128xf32, #tpu.memory_space<vmem>>, vector<8x128xf32>
      %c0_12 = arith.constant 0 : index
      %c0_13 = arith.constant 0 : index
      %13 = vector.load %arg5[%c0_12, %c0_13] : memref<1x128xf32, #tpu.memory_space<vmem>>, vector<1x128xf32>
      %14 = vector.broadcast %13 : vector<1x128xf32> to vector<8x128xf32>
      %15 = arith.addf %12, %14 : vector<8x128xf32>
      %16 = arith.negf %15 : vector<8x128xf32>
      %17 = math.exp %16 : vector<8x128xf32>
      %cst_14 = arith.constant 1.000000e+00 : f32
      %18 = vector.broadcast %cst_14 : f32 to vector<8x128xf32>
      %19 = arith.addf %18, %17 : vector<8x128xf32>
      %20 = arith.divf %18, %19 : vector<8x128xf32>
      %c0_15 = arith.constant 0 : index
      %c0_16 = arith.constant 0 : index
      %21 = vector.load %arg6[%c0_15, %c0_16] : memref<8x128xf32, #tpu.memory_space<vmem>>, vector<8x128xf32>
      tpu.vector_store %arg6[%c0_15, %c0_16], %20 {strides = array<i32>} : memref<8x128xf32, #tpu.memory_space<vmem>>, vector<8x128xf32>,
    } else {
    }
    return
  }
  func.func @transform_0(%arg0: i32, %arg1: i32, %arg2: i32) -> (i32, i32) {
    %c0_i32 = arith.constant 0 : i32
    return %arg0, %arg2 : i32, i32
  }
  func.func @transform_1(%arg0: i32, %arg1: i32, %arg2: i32) -> (i32, i32) {
    %c0_i32 = arith.constant 0 : i32
    return %arg1, %arg2 : i32, i32
  }
  func.func @transform_2(%arg0: i32, %arg1: i32, %arg2: i32) -> (i32, i32) {
    %c0_i32 = arith.constant 0 : i32
    %c0_i32_0 = arith.constant 0 : i32
    return %c0_i32, %arg1 : i32, i32
  }
  func.func @transform_3(%arg0: i32, %arg1: i32, %arg2: i32) -> (i32, i32) {
    %c0_i32 = arith.constant 0 : i32
    return %arg0, %arg1 : i32, i32
  }
}

</mosaic_0001>

<bundles_post_ra>
// kernel: rbm_layer_forward.1
= control target key start
LH: loop header
LB: loop body
LE: loop exit
PB: predicated region body
PF: predicated region fallthrough
CT: control target
= control target key end

     0   :  { %v226_v1 = vmov 0.0   ;;  %vm227_vm0 = vmmov 0   ;;  %s306_s0 = inlined_call_operand.vmem [shape: f32[8,128], index: 0, kind: input, shape index: {}]   ;;  %s307_s1 = inlined_call_operand.vmem [shape: f32[128,128], index: 1, kind: input, shape index: {}]   ;;  %s308_s2 = inlined_call_operand.vmem [shape: f32[1,128], index: 2, kind: input, shape index: {}]   ;;  %s309_s3 = inlined_call_operand.hbm [shape: f32[8,128], index: 3, kind: output, shape index: {}]  }
   0x1   :  { %v37_v0 = vld [vmem:[%s307_s1 + $0x78] sm:$0xff]  ;;  %162 = vmatprep.subr.mxu0 %v226_v1  ;;  %194 = vmatprep.mubr.msk.f32.mxu0 %vm227_vm0, %v226_v1  ;;  %v36_v2 = vld [vmem:[%s307_s1 + $0x70] sm:$0xff] }
   0x2   :  { %163 = vmatpush3.xpose.msra.mxu0 %v37_v0 }
   0x3   :  { %164 = vmatprep.subr.mxu0 %v226_v1 }
   0x4   :  { %8 = vsyncpa [#allocation4], 0  ;;  %v35_v3 = vld [vmem:[%s307_s1 + $0x68] sm:$0xff]  ;;  %v34_v4 = vld [vmem:[%s307_s1 + $0x60] sm:$0xff]  ;;  %s228_s21 = smov [#allocation3]  }
   0x5   :  { %v33_v5 = vld [vmem:[%s307_s1 + $0x58] sm:$0xff]  ;;  %v32_v6 = vld [vmem:[%s307_s1 + $0x50] sm:$0xff]  ;;  %v31_v7 = vld [vmem:[%s307_s1 + $0x48] sm:$0xff] }
   0x6   :  { %165 = vmatpush3.xpose.msra.mxu0 %v36_v2  ;;  %v30_v8 = vld [vmem:[%s307_s1 + $0x40] sm:$0xff]  ;;  %v29_v9 = vld [vmem:[%s307_s1 + $0x38] sm:$0xff]  ;;  %v28_v10 = vld [vmem:[%s307_s1 + $0x30] sm:$0xff] }
   0x7   :  { %166 = vmatprep.subr.mxu0 %v226_v1  ;;  %v27_v11 = vld [vmem:[%s307_s1 + $0x28] sm:$0xff]  ;;  %v26_v12 = vld [vmem:[%s307_s1 + $0x20] sm:$0xff]  ;;  %v25_v13 = vld [vmem:[%s307_s1 + $0x18] sm:$0xff] }
   0x8   :  { %v24_v14 = vld [vmem:[%s307_s1 + $0x10] sm:$0xff]  ;;  %v23_v15 = vld [vmem:[%s307_s1 + $0x8] sm:$0xff]  ;;  %v22_v16 = vld [vmem:[%s307_s1] sm:$0xff]  ;;  %s135_s1 = sshll.u32 %s228_s21, 4  ;;  %s136_s1 = int_to_ptr.vmem [resolvable:$true] %s135_s1 }
   0x9   :  { %v21_v17 = vld [vmem:[%s306_s0] sm:$0xff]  ;;  %s204_s22 = scalar_lea.vmem %s136_s1, 128  ;;  %p209_p1 = scmp.lt.s32.totalorder %s136_s1, %s136_s1 }
   0xa   :  { %167 = vmatpush3.xpose.msra.mxu0 %v35_v3  ;;  %v143_v18 = vld [vmem:[%s308_s2] ss:$0 sm:$0xff]  ;;  %p205_p0 = scmp.ne.s32.totalorder %s136_s1, %s204_s22  ;;  %p210_p2 = scmp.lt.s32.totalorder %s204_s22, %s204_s22 }
   0xb   :  { %168 = vmatprep.subr.mxu0 %v226_v1 }
   0xc   :  { %p211_p3 = por %p210_p2, %p209_p1 }
   0xe   :  { %169 = vmatpush3.xpose.msra.mxu0 %v34_v4  ;;  %p212_p4 = pnand %p211_p3, %p205_p0 }
   0xf   :  { %170 = vmatprep.subr.mxu0 %v226_v1 }
  0x12   :  { %171 = vmatpush3.xpose.msra.mxu0 %v33_v5 }
  0x13   :  { %172 = vmatprep.subr.mxu0 %v226_v1 }
  0x16   :  { %173 = vmatpush3.xpose.msra.mxu0 %v32_v6 }
  0x17   :  { %174 = vmatprep.subr.mxu0 %v226_v1 }
  0x1a   :  { %175 = vmatpush3.xpose.msra.mxu0 %v31_v7 }
  0x1b   :  { %176 = vmatprep.subr.mxu0 %v226_v1 }
  0x1e   :  { %177 = vmatpush3.xpose.msra.mxu0 %v30_v8 }
  0x1f   :  { %178 = vmatprep.subr.mxu0 %v226_v1 }
  0x22   :  { %179 = vmatpush3.xpose.msra.mxu0 %v29_v9 }
  0x23   :  { %180 = vmatprep.subr.mxu0 %v226_v1 }
  0x26   :  { %181 = vmatpush3.xpose.msra.mxu0 %v28_v10 }
  0x27   :  { %182 = vmatprep.subr.mxu0 %v226_v1 }
  0x2a   :  { %183 = vmatpush3.xpose.msra.mxu0 %v27_v11 }
  0x2b   :  { %184 = vmatprep.subr.mxu0 %v226_v1 }
  0x2e   :  { %185 = vmatpush3.xpose.msra.mxu0 %v26_v12 }
  0x2f   :  { %186 = vmatprep.subr.mxu0 %v226_v1 }
  0x32   :  { %187 = vmatpush3.xpose.msra.mxu0 %v25_v13 }
  0x33   :  { %188 = vmatprep.subr.mxu0 %v226_v1 }
  0x36   :  { %189 = vmatpush3.xpose.msra.mxu0 %v24_v14 }
  0x37   :  { %190 = vmatprep.subr.mxu0 %v226_v1 }
  0x3a   :  { %191 = vmatpush3.xpose.msra.mxu0 %v23_v15 }
  0x3b   :  { %192 = vmatprep.subr.mxu0 %v226_v1 }
  0x3e   :  { %193 = vmatpush3.xpose.msra.mxu0 %v22_v16 }
  0x41   :  { %195 = vmatmul.mubr.f32.vlgmr.msra.gmra.mxu0 %v21_v17 }
 0x101   :  { %v104_v19 = vpop.f32.mrf.mxu0 }
 0x102   :  { %v121_v20 = vadd.f32 %v143_v18, %v104_v19 }
 0x103   :  { %v196_v21 = vpop.f32.mrf.mxu0 }
 0x104   :  { %v144_v22 = vmul.f32 -1.442695, %v121_v20 }
 0x106   :  { %200 = vpow2.f32 %v144_v22 }
 0x113   :  { %v201_v23 = vpop.eup %200 }
 0x114   :  { %v125_v24 = vadd.f32 1.0, %v201_v23 }
 0x116   :  { %202 = vrcp.f32 %v125_v24 }
 0x123   :  { %v203_v25 = vpop.eup %202 }
 0x124   :  { %128 = vst [vmem:[#allocation3] sm:$0xff] %v203_v25 }
 0x125   :  { %215 = shalt.err (!%p212_p4)
}
 0x126   :  { %138 = dma.vmem_to_hbm [thread:$0]  %s136_s1, 128, %s309_s3, [#allocation4]  }
 0x127   :  { %224 = dma.done.wait [#allocation4], 128  }
 0x128   :  { %225 = vsyncadd [#allocation4], 4294967168 }
 0x129   :  { %142 = vsyncpa [#allocation4], 1 }

</bundles_post_ra>
